<compile_context>
chip_gen: v6e
topology: v6e:2x2x1
jax: 0.10.0
libtpu: 0.0.40
codegen_flags: <defaults>
</compile_context>

<pallas_src>
import functools
import math

import jax
import jax.numpy as jnp
from jax import lax
from jax.experimental import pallas as pl
from jax.experimental.pallas import tpu as pltpu


# ---------------------------------------------------------------------------
# Fused single-head self-attention kernel (one grid step per batch element).
# ---------------------------------------------------------------------------
def self_attention_kernel(x_ref, wqkv_ref, o_ref, *, head_size, causal):
    x = x_ref[0]            # (T, E)
    wqkv = wqkv_ref[...]    # (E, 3*Dh)  stacked [Wq | Wk | Wv]

    # Single MXU matmul for all three projections.
    qkv = jnp.dot(x, wqkv, preferred_element_type=jnp.float32)  # (T, 3*Dh)
    q = qkv[:, 0 * head_size:1 * head_size]                     # (T, Dh)
    k = qkv[:, 1 * head_size:2 * head_size]                     # (T, Dh)
    v = qkv[:, 2 * head_size:3 * head_size]                     # (T, Dh)

    # scores = q @ k^T / sqrt(Dh) without materializing a transpose of k:
    # contract the last dim of both operands directly on the MXU.
    scale = 1.0 / math.sqrt(head_size)
    scores = lax.dot_general(
        q, k, (((1,), (1,)), ((), ())),
        preferred_element_type=jnp.float32) * scale              # (T, T)

    if causal:
        T = scores.shape[0]
        row = lax.broadcasted_iota(jnp.int32, (T, T), 0)
        col = lax.broadcasted_iota(jnp.int32, (T, T), 1)
        scores = jnp.where(col <= row, scores, -jnp.inf)

    # Numerically-stable softmax (f32 on VPU; exp + reciprocal go to EUP).
    scores = scores - jnp.max(scores, axis=-1, keepdims=True)
    p = jnp.exp(scores)
    p = p * pl.reciprocal(jnp.sum(p, axis=-1, keepdims=True), approx=True)

    # dropout(0.2) -> identity (eval mode)
    o_ref[0] = jnp.dot(p, v, preferred_element_type=jnp.float32)  # (T, Dh)


def self_attention(x, wq, wk, wv, *, is_decoder=False):
    """x: (B, T, E); wq/wk/wv: (E, Dh) (transposed nn.Linear weights, q = x @ wq)."""
    B, T, E = x.shape
    Dh = wq.shape[1]

    # Stack the three projection matrices -> one (E, 3*Dh) MXU operand.
    wqkv = jnp.concatenate([wq, wk, wv], axis=1)

    kernel = functools.partial(self_attention_kernel,
                               head_size=Dh, causal=is_decoder)

    return pl.pallas_call(
        kernel,
        out_shape=jax.ShapeDtypeStruct((B, T, Dh), jnp.float32),
        grid_spec=pltpu.PrefetchScalarGridSpec(
            num_scalar_prefetch=0,
            grid=(B,),
            in_specs=[
                pl.BlockSpec((1, T, E), lambda b: (b, 0, 0)),
                # constant index_map -> weights staged once, no per-step re-DMA
                pl.BlockSpec((E, 3 * Dh), lambda b: (0, 0)),
            ],
            out_specs=pl.BlockSpec((1, T, Dh), lambda b: (b, 0, 0)),
        ),
        compiler_params=pltpu.CompilerParams(
            # "parallel" batch axis: v7x's 2 TensorCores each take a batch
            # element; measured-neutral on v5e/v6e.
            dimension_semantics=("parallel",)),
    )(x, wqkv)


def reference(x, wq, wk, wv, *, is_decoder=False):
    """Plain-JAX reference of the PyTorch forward (eval mode, mask=None)."""
    q = x @ wq
    k = x @ wk
    v = x @ wv
    s = (q @ jnp.swapaxes(k, -2, -1)) / math.sqrt(k.shape[-1])
    if is_decoder:
        T = x.shape[1]
        tril = jnp.tril(jnp.ones((T, T), dtype=jnp.float32))
        s = jnp.where(tril == 0, -jnp.inf, s)
    p = jax.nn.softmax(s, axis=-1)
    return p @ v


if __name__ == "__main__":
    # Shapes consistent with SelfAttention(embedding_size=32, head_size=8,
    # block_size=8) applied to x of shape (batch=2, seq=8, embed=32).
    B, T, E, Dh = 2, 8, 32, 8

    key = jax.random.PRNGKey(0)
    k_x, k_q, k_k, k_v = jax.random.split(key, 4)

    x = jax.random.normal(k_x, (B, T, E), dtype=jnp.float32)

    # nn.Linear(bias=False) default init: U(-1/sqrt(fan_in), 1/sqrt(fan_in)),
    # stored here already transposed so that q = x @ wq.
    lim = 1.0 / math.sqrt(E)
    wq = jax.random.uniform(k_q, (E, Dh), jnp.float32, -lim, lim)
    wk = jax.random.uniform(k_k, (E, Dh), jnp.float32, -lim, lim)
    wv = jax.random.uniform(k_v, (E, Dh), jnp.float32, -lim, lim)

    # --- encoder path (is_decoder=False, mask=None): the default call path ---
    out = self_attention(x, wq, wk, wv, is_decoder=False)
    out = jax.block_until_ready(out)
    ref = reference(x, wq, wk, wv, is_decoder=False)
    assert out.shape == (B, T, Dh)
    # tolerance accounts for the EUP approximate reciprocal in the softmax
    assert jnp.allclose(out, ref, atol=1e-3, rtol=1e-3), "encoder mismatch"

    # --- decoder path (causal tril masking) ---
    out_c = self_attention(x, wq, wk, wv, is_decoder=True)
    out_c = jax.block_until_ready(out_c)
    ref_c = reference(x, wq, wk, wv, is_decoder=True)
    assert jnp.allclose(out_c, ref_c, atol=1e-3, rtol=1e-3), "decoder mismatch"

    print("KERNEL_OK")
</pallas_src>

<mosaic_0001>
module attributes {stable_mosaic.version = 11 : i64} {
  func.func @self_attention_kernel(%arg0: i32, %arg1: memref<1x8x32xf32, #tpu.memory_space<vmem>>, %arg2: memref<32x24xf32, #tpu.memory_space<vmem>>, %arg3: memref<1x8x8xf32, #tpu.memory_space<vmem>>) attributes {dimension_semantics = [#tpu.dimension_semantics<parallel>], iteration_bounds = array<i64: 2>, scalar_prefetch = 0 : i64, scratch_operands = 0 : i64, tpu.core_type = #tpu.core_type<tc>, window_params = [{transform_indices = @transform_0, window_bounds = array<i64: 1, 8, 32>}, {pipeline_mode = #tpu.pipeline_mode<synchronous>, transform_indices = @transform_1, window_bounds = array<i64: 32, 24>}, {transform_indices = @transform_2, window_bounds = array<i64: 1, 8, 8>}]} {
    %c0 = arith.constant 0 : index
    %c0_0 = arith.constant 0 : index
    %c0_1 = arith.constant 0 : index
    %0 = vector.load %arg1[%c0, %c0_0, %c0_1] : memref<1x8x32xf32, #tpu.memory_space<vmem>>, vector<1x8x32xf32>
    %1 = vector.shape_cast %0 : vector<1x8x32xf32> to vector<8x32xf32>
    %c0_2 = arith.constant 0 : index
    %c0_3 = arith.constant 0 : index
    %2 = vector.load %arg2[%c0_2, %c0_3] : memref<32x24xf32, #tpu.memory_space<vmem>>, vector<32x24xf32>
    %cst = arith.constant dense<0.000000e+00> : vector<8x24xf32>
    %3 = tpu.matmul %1, %2, %cst {dimension_numbers = #tpu.dot_dimension_numbers<[1], [0], [0], [1], [0, 0, 1, 1], [], []>} : vector<8x32xf32>, vector<32x24xf32>, vector<8x24xf32> -> vector<8x24xf32>
    %4 = vector.extract_strided_slice %3 {offsets = [0, 0], sizes = [8, 8], strides = [1, 1]} : vector<8x24xf32> to vector<8x8xf32>
    %5 = vector.extract_strided_slice %3 {offsets = [0, 8], sizes = [8, 8], strides = [1, 1]} : vector<8x24xf32> to vector<8x8xf32>
    %6 = vector.extract_strided_slice %3 {offsets = [0, 16], sizes = [8, 8], strides = [1, 1]} : vector<8x24xf32> to vector<8x8xf32>
    %cst_4 = arith.constant dense<0.000000e+00> : vector<8x8xf32>
    %7 = tpu.matmul %4, %5, %cst_4 {dimension_numbers = #tpu.dot_dimension_numbers<[1], [1], [0], [0], [0, 0, 1, 0], [], []>} : vector<8x8xf32>, vector<8x8xf32>, vector<8x8xf32> -> vector<8x8xf32>
    %cst_5 = arith.constant 0.353553385 : f32
    %8 = vector.broadcast %cst_5 : f32 to vector<8x8xf32>
    %9 = arith.mulf %7, %8 : vector<8x8xf32>
    %cst_6 = arith.constant dense<0xFF800000> : vector<8xf32>
    %10 = vector.multi_reduction <maximumf>, %9, %cst_6 [1] : vector<8x8xf32> to vector<8xf32>
    %11 = vector.shape_cast %10 : vector<8xf32> to vector<8x1xf32>
    %12 = vector.broadcast %11 : vector<8x1xf32> to vector<8x8xf32>
    %13 = arith.subf %9, %12 : vector<8x8xf32>
    %14 = math.exp %13 : vector<8x8xf32>
    %cst_7 = arith.constant dense<0.000000e+00> : vector<8xf32>
    %15 = vector.multi_reduction <add>, %14, %cst_7 [1] : vector<8x8xf32> to vector<8xf32>
    %16 = vector.shape_cast %15 : vector<8xf32> to vector<8x1xf32>
    %17 = tpu.reciprocal %16 {approx = true} : vector<8x1xf32> -> vector<8x1xf32>
    %18 = vector.broadcast %17 : vector<8x1xf32> to vector<8x8xf32>
    %19 = arith.mulf %14, %18 : vector<8x8xf32>
    %cst_8 = arith.constant dense<0.000000e+00> : vector<8x8xf32>
    %20 = tpu.matmul %19, %6, %cst_8 {dimension_numbers = #tpu.dot_dimension_numbers<[1], [0], [0], [1], [0, 0, 1, 1], [], []>} : vector<8x8xf32>, vector<8x8xf32>, vector<8x8xf32> -> vector<8x8xf32>
    %c0_9 = arith.constant 0 : index
    %c0_10 = arith.constant 0 : index
    %c0_11 = arith.constant 0 : index
    %21 = vector.load %arg3[%c0_9, %c0_10, %c0_11] : memref<1x8x8xf32, #tpu.memory_space<vmem>>, vector<1x8x8xf32>
    %22 = vector.shape_cast %21 : vector<1x8x8xf32> to vector<8x8xf32>
    %23 = vector.shape_cast %20 : vector<8x8xf32> to vector<1x8x8xf32>
    tpu.vector_store %arg3[%c0_9, %c0_10, %c0_11], %23 {strides = array<i32>} : memref<1x8x8xf32, #tpu.memory_space<vmem>>, vector<1x8x8xf32>,
    return
  }
  func.func @transform_0(%arg0: i32) -> (i32, i32, i32) {
    %c0_i32 = arith.constant 0 : i32
    %c0_i32_0 = arith.constant 0 : i32
    %c0_i32_1 = arith.constant 0 : i32
    return %arg0, %c0_i32, %c0_i32_0 : i32, i32, i32
  }
  func.func @transform_1(%arg0: i32) -> (i32, i32) {
    %c0_i32 = arith.constant 0 : i32
    %c0_i32_0 = arith.constant 0 : i32
    %c0_i32_1 = arith.constant 0 : i32
    return %c0_i32, %c0_i32_0 : i32, i32
  }
  func.func @transform_2(%arg0: i32) -> (i32, i32, i32) {
    %c0_i32 = arith.constant 0 : i32
    %c0_i32_0 = arith.constant 0 : i32
    %c0_i32_1 = arith.constant 0 : i32
    return %arg0, %c0_i32, %c0_i32_0 : i32, i32, i32
  }
}

</mosaic_0001>

<bundles_post_ra>
// kernel: tpu_custom_call.1
= control target key start
LH: loop header
LB: loop body
LE: loop exit
PB: predicated region body
PF: predicated region fallthrough
CT: control target
= control target key end

     0   :  { %7 = vsyncpa [#allocation3], 0  ;;  %s751_s0 = inlined_call_operand.vmem [shape: f32[2,8,32], index: 0, kind: input, shape index: {}]   ;;  %s752_s1 = inlined_call_operand.vmem [shape: f32[32,24], index: 1, kind: input, shape index: {}]   ;;  %s753_s2 = inlined_call_operand.hbm [shape: f32[2,8,8], index: 2, kind: output, shape index: {}]  }
   0x1   :  { %9 = vsyncpa [#allocation3 + $0x1], 0  ;;  %s631_s9 = smov 0   ;;  %s633_s10 = smov 0  }
   0x2   :  { %s635_s11 = smov 0   ;;  %s637_s12 = smov 0  }
   0x3 LB: > { %s652_s13 = sadd.s32 4294967295, %s609_s12   ;;  %s458_s14 = sadd.s32 4294967294, %s609_s12   ;;  %s609_s12 = sphi %s637_s12, %s759_s12   ;;  %s605_s11 = sphi %s635_s11, %s758_s11   ;;  %s601_s10 = sphi %s633_s10, %s757_s10   ;;  %s597_s9 = sphi %s631_s9, %s756_s9  }
   0x4   : > { %s656_s15 = sadd.s32 1, %s609_s12   ;;  %s69_s16 = sadd.s32 1, %s605_s11 }
   0x5   : > { %s66_s17 = ssub.s32 %s609_s12, %s656_s15  ;;  %p79_p0 = scmp.ne.s32.totalorder %s605_s11, %s601_s10 }
   0x6   : > { %p67_p1 = scmp.eq.s32.totalorder %s66_s17, 0  ;;  %p80_p2 = scmp.eq.s32.totalorder %s652_s13, 1 }
   0x7   : > { %p85_p3 = scmp.ne.s32.totalorder %s601_s10, %s597_s9  ;;  %p86_p4 = scmp.eq.s32.totalorder %s458_s14, 1 }
   0x8   : > { %s667_s18 = scalar_select %p67_p1, %s605_s11, %s69_s16  }
   0x9   : > { %p669_p5 = por %p80_p2, %p79_p0  ;;  %p673_p6 = por %p86_p4, %p85_p3 }
   0xa   : > { %p461_p7 = scmp.ge.s32.totalorder %s609_s12, 1  ;;  %p114_p8 = scmp.lt.s32.totalorder %s609_s12, 3 }
   0xc   : > { %p115_p9 = pnand %p461_p7, %p114_p8 }
   0xd   : > { %p135_p10 = scmp.lt.s32.totalorder (!%p115_p9), %s652_s13, 1  ;;  %s613_s6 = smov (!%p115_p9), 120  }
   0xe   : > { %118 = sbr.rel (%p115_p9) target bundleno = 1053 (0x41d), region = 28  ;;  %s614_s7 = smov (!%p115_p9), 112  }
   0xf   : > { %s132_s8 = sand.u32 (!%p115_p9), 1, %s601_s10   ;;  %s469_s16 = sshll.u32 (!%p115_p9), %s652_s13, 7 }
  0x10   : > { %s462_s14 = sshll.u32 (!%p115_p9), %s132_s8, 3  ;;  %s709_s24 = scalar_lea.hbm (!%p115_p9), %s753_s2, %s469_s16 }
  0x11   : > { %s134_s17 = scalar_lea.vmem (!%p115_p9), [#allocation2], %s462_s14 }
  0x12   : > { %s399_s21 = sshll.u32 (!%p115_p9), %s134_s17, 4  ;;  %s711_s21 = int_to_ptr.vmem [resolvable:$true] %s399_s21 }
  0x13   : > { %v143_v0 = vld [vmem:[%s752_s1 + $0x18] sm:$0xff]  ;;  %v611_v1 = vmov 0.0   ;;  %v142_v2 = vld [vmem:[%s752_s1 + $0x10] sm:$0xff]  ;;  %vm612_vm0 = vmmov 0   ;;  %s136_s25 = scalar_select %p135_p10, %s652_s13, 1  ;;  %v141_v3 = vld [vmem:[%s752_s1 + $0x8] sm:$0xff] }
  0x14   : > { %481 = vmatprep.subr.mxu0 %v611_v1  ;;  %489 = vmatprep.mubr.msk.f32.mxu0 %vm612_vm0, %v611_v1  ;;  %v140_v4 = vld [vmem:[%s752_s1] sm:$0xff]  ;;  %vm144_vm1 = vcmask 261120   ;;  %vm221_vm2 = vcmask 64512   ;;  %s549_s26 = scalar_lea.vmem %s711_s21, 128  ;;  %s615_s13 = smov [#allocation2]  }
  0x15   : > { %482 = vmatpush3.msra.mxu0 %v143_v0  ;;  %492 = vmatprep.subr.mxu1 %v611_v1  ;;  %s463_s28 = sshll.u32 %s136_s25, 3  ;;  %s386_s25 = scalar_lea.sflag [#allocation3], %s132_s8 }
  0x16   : > { %483 = vmatprep.subr.mxu0 %v611_v1  ;;  %494 = vmatprep.mubr.msk.f32.mxu1 %vm612_vm0, %v611_v1  ;;  %s138_s5 = scalar_lea.vmem %s751_s0, %s463_s28  ;;  %p550_p11 = scmp.ne.s32.totalorder %s711_s21, %s549_s26 }
  0x17   : > { %484 = vmatpush3.msra.mxu0 %v142_v2  ;;  %v139_v5 = vld [vmem:[%s138_s5] sm:$0xff]  ;;  %s553_s27 = sshll.u32 %s615_s13, 4  ;;  %s554_s27 = int_to_ptr.vmem [resolvable:$false] %s553_s27 }
  0x18   : > { %485 = vmatprep.subr.mxu0 %v611_v1  ;;  %p551_p12 = pnand %p550_p11, %p669_p5  ;;  %s555_s28 = scalar_lea.vmem %s554_s27, 256 }
  0x19   : > { %486 = vmatpush3.msra.mxu0 %v141_v3  ;;  %p556_p0 = scmp.lt.s32.totalorder %s711_s21, %s554_s27  ;;  %p557_p1 = scmp.lt.s32.totalorder %s555_s28, %s549_s26 }
  0x1a   : > { %487 = vmatprep.subr.mxu0 %v611_v1  ;;  %p552_p13 = pneg %p551_p12 }
  0x1b   : > { %488 = vmatpush3.msra.mxu0 %v140_v4  ;;  %p558_p2 = por %p557_p1, %p556_p0 }
  0x1c   : > { %490 = vmatmul.mubr.msk.f32.vlgmr.msra.gmra.mxu0 %vm144_vm1, %v139_v5 }
  0x1d   : > { %p559_p3 = pnand %p558_p2, %p552_p13 }
  0xdc   : > { %v214_v6 = vpop.f32.mrf.mxu0 }
  0xdd   : > { %219 = vrot.lane.b32.xlu0 %v214_v6, %s613_s6 }
  0xde   : > { %v491_v7 = vpop.f32.mrf.mxu0 }
 0x14f   : > { %v220_v8 = vpop.permute.xlu0 %219 }
 0x150   : > { %493 = vmatpush3.xpose.msk.msra.mxu1 %vm221_vm2, %v220_v8 }
 0x151   : > { %497 = vmatprep.subr.mxu1 %v611_v1 }
 0x153   : > { %495 = vmatmul.mubr.msk.f32.vlgmr.msra.gmra.mxu1 %vm221_vm2, %v214_v6 }
 0x154   : > { %499 = vmatprep.mubr.msk.f32.mxu1 %vm612_vm0, %v611_v1 }
 0x213   : > { %v292_v9 = vpop.f32.mrf.mxu1 }
 0x214   : > { %v296_v10 = vmul.f32 0.35355338, %v292_v9 }
 0x215   : > { %v496_v11 = vpop.f32.mrf.mxu1 }
 0x216   : > { %v297_v12 = vsel %vm221_vm2, %v296_v10, -inf }
 0x217   : > { %298 = vmax.xlane.f32.xlu0 %v297_v12 }
 0x2a0   : > { %v299_v13 = vpop.xlane.xlu0 %298 }
 0x2a1   : > { %v300_v14 = vsub.f32 %v296_v10, %v299_v13 }
 0x2a3   : > { %v301_v15 = vmul.f32 1.442695, %v300_v14 }
 0x2a5   : > { %545 = vpow2.f32 %v301_v15 }
 0x2b2   : > { %v546_v16 = vpop.eup %545 }
 0x2b3   : > { %v303_v17 = vsel %vm221_vm2, %v546_v16, 0.0 }
 0x2b4   : > { %304 = vadd.xlane.f32.xlu1 %v303_v17 }
 0x2c5   : > { %308 = vrot.lane.b32.xlu1 %v214_v6, %s614_s7 }
 0x33d   : > { %v305_v18 = vpop.xlane.xlu1 %304 }
 0x33e   : > { %547 = vrcp.f32 %v305_v18 }
 0x341   : > { %v309_v19 = vpop.permute.xlu1 %308 }
 0x342   : > { %498 = vmatpush3.msra.mxu1 %v309_v19 }
 0x34b   : > { %v548_v20 = vpop.eup %547 }
 0x34c   : > { %v307_v21 = vmul.f32 %v548_v20, %v546_v16 }
 0x34e   : > { %500 = vmatmul.mubr.msk.f32.vlgmr.msra.gmra.mxu1 %vm221_vm2, %v307_v21 }
 0x40e   : > { %v380_v22 = vpop.f32.mrf.mxu1 }
 0x40f   : > { %384 = vst.msk [vmem:[%s134_s17] sm:$0xff] %vm221_vm2, %v380_v22 }
 0x410   : > { %v501_v23 = vpop.f32.mrf.mxu1 }
 0x411   : > { %562 = shalt.err (!%p559_p3)
}
 0x412   : > { %s563_s29 = scalar_lea.hbm %s709_s24, 128  ;;  %s567_s4 = scalar_lea.hbm %s753_s2, 256 }
 0x413   : > { %p564_p4 = scmp.ne.s32.totalorder %s709_s24, %s563_s29  ;;  %p568_p9 = scmp.lt.s32.totalorder %s709_s24, %s753_s2 }
 0x414   : > { %p569_p10 = scmp.lt.s32.totalorder %s567_s4, %s563_s29 }
 0x415   : > { %p565_p7 = pnand %p564_p4, %p669_p5 }
 0x416   : > { %p570_p11 = por %p569_p10, %p568_p9 }
 0x417   : > { %p566_p8 = pneg %p565_p7 }
 0x419   : > { %p571_p12 = pnand %p570_p11, %p566_p8 }
 0x41b   : > { %574 = shalt.err (!%p571_p12)
}
 0x41c   : > { %502 = dma.vmem_to_hbm [thread:$0]  (%p669_p5), %s711_s21, 128, %s709_s24, %s386_s25  }
 0x41d PF: > { %p508_p13 = scmp.ge.s32.totalorder %s609_s12, 2  ;;  %s411_s7 = sand.u32 1, %s597_s9  }
 0x41e   : > { %s412_s8 = scalar_lea.sflag [#allocation3], %s411_s7 }
 0x41f   : > { %p505_p0 = pnand %p508_p13, %p673_p6 }
 0x421   : > { %p506_p1 = pneg %p505_p0 }
 0x423   : > { %592 = dma.done.wait (%p506_p1), %s412_s8, 128  }
 0x424   : > { %594 = vsyncadd (%p506_p1), %s412_s8, 4294967168  ;;  %p12_p2 = scmp.ge.s32.totalorder %s656_s15, 4   ;;  %s756_s9 = smov %s601_s10 }
 0x425   : > { %s757_s10 = smov %s605_s11  ;;  %s758_s11 = smov %s667_s18 }
 0x426   : > { %s759_s12 = smov %s656_s15  ;;  %14 = sbr.rel (!%p12_p2) target bundleno = 3 (0x3), region = 63 }
 0x42b   :  { %417 = vsyncpa [#allocation3], 1 }
 0x42c   :  { %419 = vsyncpa [#allocation3 + $0x1], 1 }

</bundles_post_ra>
